<compile_context>
chip_gen: v7x
topology: tpu7x:2x2x1
jax: 0.10.0
libtpu: 0.0.40
codegen_flags: <defaults>
</compile_context>

<pallas_src>
import functools

import jax
import jax.numpy as jnp
from jax.experimental import pallas as pl
from jax.experimental.pallas import tpu as pltpu


def _round_up(v, m):
    return (v + m - 1) // m * m


# --------------------------- fused Pallas kernel ---------------------------
def _fused_decoder_kernel(*refs, cfgs, n_blocks, guard):
    """All DecoderTCNBlocks for one batch element (one grid step).

    refs: x, W[0..n-1], bias[0..n-1], prelu_a[0..n-1], alpha[0..n-1],
          skip[0..n-1], out, pad_scratch.
    cfgs[i] = (K, d, C_in_r, C_out_r, L_in, L_out, U, W) static ints where
      U = round_up(L_in, 128)  (lane width the block's input arrives at)
      W = round_up(L_out, 128) (lane width the block's output is produced at).
    """
    x_ref = refs[0]
    w_refs = refs[1:1 + n_blocks]
    b_refs = refs[1 + n_blocks:1 + 2 * n_blocks]
    a_refs = refs[1 + 2 * n_blocks:1 + 3 * n_blocks]
    al_refs = refs[1 + 3 * n_blocks:1 + 4 * n_blocks]
    skip_refs = refs[1 + 4 * n_blocks:1 + 5 * n_blocks]
    out_ref = refs[1 + 5 * n_blocks]
    pad_ref = refs[2 + 5 * n_blocks]     # VMEM scratch (C_max_r, guard + W_max)

    # Clear the guard scratch once per grid step (removes stale data from the
    # previous batch element; one tiny aligned splat store).
    pad_ref[...] = jnp.zeros_like(pad_ref)

    act = x_ref[...]                     # (C_in_r0, U0): zeros beyond L0 / C0
    for i in range(n_blocks):
        K, d, C_in_r, C_out_r, L_in, L_out, U, W = cfgs[i]

        # One lane-aligned, unmasked, full-width store of the activation into
        # the guard-padded scratch ...
        pad_ref[0:C_in_r, guard:guard + U] = act
        # ... then read the K dilated taps back as shifted full-width loads and
        # stack them along sublanes -> (K*C_in_r, W) operand for one deep
        # matmul.  Columns outside [guard, guard+L_in) are zero by invariant.
        taps = jnp.concatenate(
            [pad_ref[0:C_in_r, guard - d * k:guard - d * k + W]
             for k in range(K)], axis=0)

        # ConvTranspose1d(stride=1, pad=0, dilation=d) as a single MXU matmul.
        y = jnp.dot(w_refs[i][...], taps,
                    preferred_element_type=jnp.float32)      # (C_out_r, W)
        y = y + b_refs[i][...]                               # bias (VPU bcast)
        a_b = a_refs[i][...]                                 # PReLU slope
        y = jnp.where(y >= 0.0, y, a_b * y)
        act = y + al_refs[i][...] * skip_refs[i][...]        # alpha * skip

        if i + 1 < n_blocks:
            # Keep lanes >= L_out zero so the next block's shifted tap loads
            # see zeros in their guard/tail regions.
            lane = jax.lax.broadcasted_iota(jnp.int32, (C_out_r, W), 1)
            act = jnp.where(lane < L_out, act, 0.0)

    out_ref[...] = act          # (C_out_r_last, W_last): lane-dense, unmasked


# ------------------------------- wrapper ------------------------------------
def decoder_tcn_forward(x, skips, params):
    """DecoderTCN.forward with use_kl=False (conv_decode skipped)."""
    B, C0, L0 = x.shape
    n = len(params)

    # ---- static per-block geometry -------------------------------------
    cfgs = []                                # (K, d, C_in, C_out, L_in, L_out)
    L_in = L0
    for prm in params:
        C_in, C_out, K = prm["W"].shape
        d = int(prm["dilation"])
        L_out = L_in + d * (K - 1)
        cfgs.append((K, d, C_in, C_out, L_in, L_out))
        L_in = L_out
    C_in_rs = [_round_up(c[2], 8) for c in cfgs]
    C_out_rs = [_round_up(c[3], 8) for c in cfgs]
    Us = [_round_up(c[4], 128) for c in cfgs]          # per-block input width
    Ws = [_round_up(c[5], 128) for c in cfgs]          # per-block output width
    guard = _round_up(max(c[1] * (c[0] - 1) for c in cfgs), 128)
    C_max_r = max(C_in_rs)
    scratch_w = guard + max(Ws)

    assert cfgs[0][2] == C0
    for i in range(1, n):
        assert cfgs[i][2] == cfgs[i - 1][3]            # channel chaining
        assert Us[i] == Ws[i - 1]                      # lane-width chaining

    # ---- parameter-only prep (constant-folds under jit) ----------------
    w_mats, biases, a_cols, al_cols = [], [], [], []
    for prm, cfg, cir, cor in zip(params, cfgs, C_in_rs, C_out_rs):
        K, _, C_in, C_out = cfg[0], cfg[1], cfg[2], cfg[3]
        W = prm["W"].astype(jnp.float32)               # (C_in, C_out, K)
        Wt = jnp.transpose(W, (1, 2, 0))               # (C_out, K, C_in)
        Wt = jnp.pad(Wt, ((0, cor - C_out), (0, 0), (0, cir - C_in)))
        w_mats.append(Wt.reshape(cor, K * cir))
        biases.append(jnp.zeros((cor, 1), jnp.float32)
                      .at[:C_out, 0].set(prm["b"].astype(jnp.float32)))
        a_cols.append(jnp.full((cor, 1), prm["prelu_a"], jnp.float32))
        al_cols.append(jnp.full((cor, 1), prm["alpha"], jnp.float32))

    # ---- runtime input prep: one zero-pad per tensor, batch dim untouched
    xf = x if x.dtype == jnp.float32 else x.astype(jnp.float32)
    x_p = jnp.pad(xf, ((0, 0), (0, C_in_rs[0] - C0), (0, Us[0] - L0)))
    skips_p = []
    for s, c, cor, w in zip(skips, cfgs, C_out_rs, Ws):
        sf = s if s.dtype == jnp.float32 else s.astype(jnp.float32)
        skips_p.append(jnp.pad(sf, ((0, 0), (0, cor - c[3]), (0, w - c[5]))))

    kcfgs = tuple((c[0], c[1], cir, cor, c[4], c[5], u, w)
                  for c, cir, cor, u, w in zip(cfgs, C_in_rs, C_out_rs, Us, Ws))
    kernel = functools.partial(_fused_decoder_kernel, cfgs=kcfgs,
                               n_blocks=n, guard=guard)

    C_f, L_f = cfgs[-1][3], cfgs[-1][5]
    C_f_r, W_f = C_out_rs[-1], Ws[-1]

    in_specs = [pl.BlockSpec((None, C_in_rs[0], Us[0]), lambda b: (b, 0, 0))]
    in_specs += [pl.BlockSpec(wm.shape, lambda b: (0, 0)) for wm in w_mats]
    in_specs += [pl.BlockSpec(bb.shape, lambda b: (0, 0)) for bb in biases]
    in_specs += [pl.BlockSpec(aa.shape, lambda b: (0, 0)) for aa in a_cols]
    in_specs += [pl.BlockSpec(aa.shape, lambda b: (0, 0)) for aa in al_cols]
    in_specs += [pl.BlockSpec((None, cor, w), lambda b: (b, 0, 0))
                 for cor, w in zip(C_out_rs, Ws)]

    out_p = pl.pallas_call(
        kernel,
        out_shape=jax.ShapeDtypeStruct((B, C_f_r, W_f), jnp.float32),
        grid=(B,),
        in_specs=in_specs,
        out_specs=pl.BlockSpec((None, C_f_r, W_f), lambda b: (b, 0, 0)),
        scratch_shapes=[pltpu.VMEM((C_max_r, scratch_w), jnp.float32)],
        compiler_params=pltpu.CompilerParams(
            dimension_semantics=("parallel",)),
    )(x_p, *w_mats, *biases, *a_cols, *al_cols, *skips_p)

    return out_p[:, :C_f, :L_f]                        # (B, n_outputs, L_final)


# ----------------------- synthetic parameter init ---------------------------
def init_decoder_tcn(key, n_outputs=1, n_blocks=3, kernel_size=5,
                     n_channels=4, dilation_growth=2):
    """Deterministic synthetic init mirroring DecoderTCN.__init__ (use_kl=False)."""
    params = []
    in_ch = None
    for n in range(n_blocks):
        if n == 0:
            if n_blocks == 1:
                in_ch_n, out_ch = n_channels, n_outputs
            else:
                in_ch_n = n_channels * 2 ** (n_blocks - 1)
                out_ch = n_channels * 2 ** (n_blocks - 2)
        elif n + 1 == n_blocks:
            in_ch_n, out_ch = in_ch, n_outputs
        else:
            in_ch_n, out_ch = in_ch, in_ch // 2
        dilation = dilation_growth ** (n_blocks - n - 1)

        key, wk = jax.random.split(key)
        # xavier_uniform_ for ConvTranspose1d weight of shape (in_ch, out_ch, K)
        bound = (6.0 / ((in_ch_n + out_ch) * kernel_size)) ** 0.5
        W = jax.random.uniform(wk, (in_ch_n, out_ch, kernel_size),
                               jnp.float32, -bound, bound)
        b = jnp.zeros((out_ch,), jnp.float32)                 # zeros_ init
        params.append(dict(W=W, b=b,
                           prelu_a=jnp.float32(0.25),         # PReLU default
                           alpha=jnp.float32(1.0),            # alpha init 1.0
                           dilation=dilation,
                           in_ch=in_ch_n, out_ch=out_ch))
        if n + 1 != n_blocks:
            in_ch = out_ch
    return params


# ---------------- pure-JAX reference for correctness check -----------------
def _conv_transpose1d_ref(x, W, b, d):
    B, Cin, Lin = x.shape
    _, Cout, K = W.shape
    Lout = Lin + d * (K - 1)
    y = jnp.zeros((B, Cout, Lout), jnp.float32)
    for k in range(K):
        zk = jnp.einsum('io,bil->bol', W[:, :, k], x)
        y = y.at[:, :, d * k:d * k + Lin].add(zk)
    return y + b[None, :, None]


def decoder_tcn_ref(x, skips, params):
    for p, skip in zip(params, skips):
        y = _conv_transpose1d_ref(x, p["W"], p["b"], p["dilation"])
        y = jnp.where(y >= 0.0, y, p["prelu_a"] * y)
        x = y + p["alpha"] * skip
    return x


if __name__ == "__main__":
    # Small config consistent with the module: n_blocks=3, kernel_size=5,
    # n_channels=4, dilation_growth=2, n_outputs=1, use_kl=False.
    n_blocks, K, n_channels, growth, n_outputs = 3, 5, 4, 2, 1
    B, L0 = 2, 16

    key = jax.random.PRNGKey(0)
    pkey, xkey, skey = jax.random.split(key, 3)
    params = init_decoder_tcn(pkey, n_outputs, n_blocks, K, n_channels, growth)

    # input x: (B, n_channels * 2**(n_blocks-1), L0) = (2, 16, 16)
    x = jax.random.normal(xkey, (B, params[0]["in_ch"], L0), jnp.float32)

    # skips must match each block's output shape
    skips = []
    L = L0
    for p in params:
        L = L + p["dilation"] * (K - 1)
        skey, sk = jax.random.split(skey)
        skips.append(jax.random.normal(sk, (B, p["out_ch"], L), jnp.float32))

    fwd = jax.jit(lambda x_, skips_: decoder_tcn_forward(x_, skips_, params))
    out = jax.block_until_ready(fwd(x, skips))

    ref = decoder_tcn_ref(x, skips, params)
    L_final = L0 + sum(p["dilation"] * (K - 1) for p in params)
    assert out.shape == (B, n_outputs, L_final), out.shape
    err = float(jnp.max(jnp.abs(out - ref)))
    assert jnp.allclose(out, ref, atol=5e-4, rtol=5e-4), err
    print("KERNEL_OK")
</pallas_src>

<mosaic_0001>
module attributes {stable_mosaic.version = 11 : i64} {
  func.func @_fused_decoder_kernel(%arg0: i32, %arg1: memref<1x16x128xf32, #tpu.memory_space<vmem>>, %arg2: memref<8x80xf32, #tpu.memory_space<vmem>>, %arg3: memref<8x40xf32, #tpu.memory_space<vmem>>, %arg4: memref<8x40xf32, #tpu.memory_space<vmem>>, %arg5: memref<8x1xf32, #tpu.memory_space<vmem>>, %arg6: memref<8x1xf32, #tpu.memory_space<vmem>>, %arg7: memref<8x1xf32, #tpu.memory_space<vmem>>, %arg8: memref<8x1xf32, #tpu.memory_space<vmem>>, %arg9: memref<8x1xf32, #tpu.memory_space<vmem>>, %arg10: memref<8x1xf32, #tpu.memory_space<vmem>>, %arg11: memref<8x1xf32, #tpu.memory_space<vmem>>, %arg12: memref<8x1xf32, #tpu.memory_space<vmem>>, %arg13: memref<8x1xf32, #tpu.memory_space<vmem>>, %arg14: memref<1x8x128xf32, #tpu.memory_space<vmem>>, %arg15: memref<1x8x128xf32, #tpu.memory_space<vmem>>, %arg16: memref<1x8x128xf32, #tpu.memory_space<vmem>>, %arg17: memref<1x8x128xf32, #tpu.memory_space<vmem>>, %arg18: memref<16x256xf32, #tpu.memory_space<vmem>>) attributes {dimension_semantics = [#tpu.dimension_semantics<parallel>], iteration_bounds = array<i64: 2>, scalar_prefetch = 0 : i64, scratch_operands = 1 : i64, tpu.core_type = #tpu.core_type<tc>, window_params = [{transform_indices = @transform_0, window_bounds = array<i64: 1, 16, 128>}, {pipeline_mode = #tpu.pipeline_mode<synchronous>, transform_indices = @transform_1, window_bounds = array<i64: 8, 80>}, {pipeline_mode = #tpu.pipeline_mode<synchronous>, transform_indices = @transform_2, window_bounds = array<i64: 8, 40>}, {pipeline_mode = #tpu.pipeline_mode<synchronous>, transform_indices = @transform_3, window_bounds = array<i64: 8, 40>}, {pipeline_mode = #tpu.pipeline_mode<synchronous>, transform_indices = @transform_4, window_bounds = array<i64: 8, 1>}, {pipeline_mode = #tpu.pipeline_mode<synchronous>, transform_indices = @transform_5, window_bounds = array<i64: 8, 1>}, {pipeline_mode = #tpu.pipeline_mode<synchronous>, transform_indices = @transform_6, window_bounds = array<i64: 8, 1>}, {pipeline_mode = #tpu.pipeline_mode<synchronous>, transform_indices = @transform_7, window_bounds = array<i64: 8, 1>}, {pipeline_mode = #tpu.pipeline_mode<synchronous>, transform_indices = @transform_8, window_bounds = array<i64: 8, 1>}, {pipeline_mode = #tpu.pipeline_mode<synchronous>, transform_indices = @transform_9, window_bounds = array<i64: 8, 1>}, {pipeline_mode = #tpu.pipeline_mode<synchronous>, transform_indices = @transform_10, window_bounds = array<i64: 8, 1>}, {pipeline_mode = #tpu.pipeline_mode<synchronous>, transform_indices = @transform_11, window_bounds = array<i64: 8, 1>}, {pipeline_mode = #tpu.pipeline_mode<synchronous>, transform_indices = @transform_12, window_bounds = array<i64: 8, 1>}, {transform_indices = @transform_13, window_bounds = array<i64: 1, 8, 128>}, {transform_indices = @transform_14, window_bounds = array<i64: 1, 8, 128>}, {transform_indices = @transform_15, window_bounds = array<i64: 1, 8, 128>}, {transform_indices = @transform_16, window_bounds = array<i64: 1, 8, 128>}]} {
    %cst = arith.constant 0.000000e+00 : f32
    %0 = vector.broadcast %cst : f32 to vector<16x256xf32>
    %c0 = arith.constant 0 : index
    %c0_0 = arith.constant 0 : index
    %1 = vector.load %arg18[%c0, %c0_0] : memref<16x256xf32, #tpu.memory_space<vmem>>, vector<16x256xf32>
    tpu.vector_store %arg18[%c0, %c0_0], %0 {strides = array<i32>} : memref<16x256xf32, #tpu.memory_space<vmem>>, vector<16x256xf32>,
    %c0_1 = arith.constant 0 : index
    %c0_2 = arith.constant 0 : index
    %c0_3 = arith.constant 0 : index
    %2 = vector.load %arg1[%c0_1, %c0_2, %c0_3] : memref<1x16x128xf32, #tpu.memory_space<vmem>>, vector<1x16x128xf32>
    %3 = vector.shape_cast %2 : vector<1x16x128xf32> to vector<16x128xf32>
    %c0_4 = arith.constant 0 : index
    %c128 = arith.constant 128 : index
    %4 = vector.load %arg18[%c0_4, %c128] : memref<16x256xf32, #tpu.memory_space<vmem>>, vector<16x128xf32>
    tpu.vector_store %arg18[%c0_4, %c128], %3 {strides = array<i32>} : memref<16x256xf32, #tpu.memory_space<vmem>>, vector<16x128xf32>,
    %c0_5 = arith.constant 0 : index
    %c128_6 = arith.constant 128 : index
    %5 = vector.load %arg18[%c0_5, %c128_6] : memref<16x256xf32, #tpu.memory_space<vmem>>, vector<16x128xf32>
    %c0_7 = arith.constant 0 : index
    %c124 = arith.constant 124 : index
    %6 = vector.load %arg18[%c0_7, %c124] : memref<16x256xf32, #tpu.memory_space<vmem>>, vector<16x128xf32>
    %c0_8 = arith.constant 0 : index
    %c120 = arith.constant 120 : index
    %7 = vector.load %arg18[%c0_8, %c120] : memref<16x256xf32, #tpu.memory_space<vmem>>, vector<16x128xf32>
    %c0_9 = arith.constant 0 : index
    %c116 = arith.constant 116 : index
    %8 = vector.load %arg18[%c0_9, %c116] : memref<16x256xf32, #tpu.memory_space<vmem>>, vector<16x128xf32>
    %c0_10 = arith.constant 0 : index
    %c112 = arith.constant 112 : index
    %9 = vector.load %arg18[%c0_10, %c112] : memref<16x256xf32, #tpu.memory_space<vmem>>, vector<16x128xf32>
    %10 = tpu.concatenate %5, %6, %7, %8, %9 in 0 : vector<16x128xf32>, vector<16x128xf32>, vector<16x128xf32>, vector<16x128xf32>, vector<16x128xf32> -> vector<80x128xf32>
    %c0_11 = arith.constant 0 : index
    %c0_12 = arith.constant 0 : index
    %11 = vector.load %arg2[%c0_11, %c0_12] : memref<8x80xf32, #tpu.memory_space<vmem>>, vector<8x80xf32>
    %cst_13 = arith.constant dense<0.000000e+00> : vector<8x128xf32>
    %12 = tpu.matmul %11, %10, %cst_13 {dimension_numbers = #tpu.dot_dimension_numbers<[1], [0], [0], [1], [0, 0, 1, 1], [], []>} : vector<8x80xf32>, vector<80x128xf32>, vector<8x128xf32> -> vector<8x128xf32>
    %c0_14 = arith.constant 0 : index
    %c0_15 = arith.constant 0 : index
    %13 = vector.load %arg5[%c0_14, %c0_15] : memref<8x1xf32, #tpu.memory_space<vmem>>, vector<8x1xf32>
    %14 = vector.broadcast %13 : vector<8x1xf32> to vector<8x128xf32>
    %15 = arith.addf %12, %14 : vector<8x128xf32>
    %c0_16 = arith.constant 0 : index
    %c0_17 = arith.constant 0 : index
    %16 = vector.load %arg8[%c0_16, %c0_17] : memref<8x1xf32, #tpu.memory_space<vmem>>, vector<8x1xf32>
    %cst_18 = arith.constant 0.000000e+00 : f32
    %17 = vector.broadcast %cst_18 : f32 to vector<8x128xf32>
    %18 = arith.cmpf oge, %15, %17 : vector<8x128xf32>
    %19 = vector.broadcast %16 : vector<8x1xf32> to vector<8x128xf32>
    %20 = arith.mulf %19, %15 : vector<8x128xf32>
    %21 = arith.select %18, %15, %20 : vector<8x128xi1>, vector<8x128xf32>
    %c0_19 = arith.constant 0 : index
    %c0_20 = arith.constant 0 : index
    %22 = vector.load %arg11[%c0_19, %c0_20] : memref<8x1xf32, #tpu.memory_space<vmem>>, vector<8x1xf32>
    %c0_21 = arith.constant 0 : index
    %c0_22 = arith.constant 0 : index
    %c0_23 = arith.constant 0 : index
    %23 = vector.load %arg14[%c0_21, %c0_22, %c0_23] : memref<1x8x128xf32, #tpu.memory_space<vmem>>, vector<1x8x128xf32>
    %24 = vector.shape_cast %23 : vector<1x8x128xf32> to vector<8x128xf32>
    %25 = vector.broadcast %22 : vector<8x1xf32> to vector<8x128xf32>
    %26 = arith.mulf %25, %24 : vector<8x128xf32>
    %27 = arith.addf %21, %26 : vector<8x128xf32>
    %28 = tpu.iota {dimensions = array<i32: 1>} : vector<8x128xi32>
    %c32_i32 = arith.constant 32 : i32
    %29 = vector.broadcast %c32_i32 : i32 to vector<8x128xi32>
    %30 = arith.cmpi slt, %28, %29 : vector<8x128xi32>
    %cst_24 = arith.constant 0.000000e+00 : f32
    %31 = vector.broadcast %cst_24 : f32 to vector<8x128xf32>
    %32 = arith.select %30, %27, %31 : vector<8x128xi1>, vector<8x128xf32>
    %c0_25 = arith.constant 0 : index
    %c128_26 = arith.constant 128 : index
    %33 = vector.load %arg18[%c0_25, %c128_26] : memref<16x256xf32, #tpu.memory_space<vmem>>, vector<8x128xf32>
    tpu.vector_store %arg18[%c0_25, %c128_26], %32 {strides = array<i32>} : memref<16x256xf32, #tpu.memory_space<vmem>>, vector<8x128xf32>,
    %c0_27 = arith.constant 0 : index
    %c128_28 = arith.constant 128 : index
    %34 = vector.load %arg18[%c0_27, %c128_28] : memref<16x256xf32, #tpu.memory_space<vmem>>, vector<8x128xf32>
    %c0_29 = arith.constant 0 : index
    %c126 = arith.constant 126 : index
    %35 = vector.load %arg18[%c0_29, %c126] : memref<16x256xf32, #tpu.memory_space<vmem>>, vector<8x128xf32>
    %c0_30 = arith.constant 0 : index
    %c124_31 = arith.constant 124 : index
    %36 = vector.load %arg18[%c0_30, %c124_31] : memref<16x256xf32, #tpu.memory_space<vmem>>, vector<8x128xf32>
    %c0_32 = arith.constant 0 : index
    %c122 = arith.constant 122 : index
    %37 = vector.load %arg18[%c0_32, %c122] : memref<16x256xf32, #tpu.memory_space<vmem>>, vector<8x128xf32>
    %c0_33 = arith.constant 0 : index
    %c120_34 = arith.constant 120 : index
    %38 = vector.load %arg18[%c0_33, %c120_34] : memref<16x256xf32, #tpu.memory_space<vmem>>, vector<8x128xf32>
    %39 = tpu.concatenate %34, %35, %36, %37, %38 in 0 : vector<8x128xf32>, vector<8x128xf32>, vector<8x128xf32>, vector<8x128xf32>, vector<8x128xf32> -> vector<40x128xf32>
    %c0_35 = arith.constant 0 : index
    %c0_36 = arith.constant 0 : index
    %40 = vector.load %arg3[%c0_35, %c0_36] : memref<8x40xf32, #tpu.memory_space<vmem>>, vector<8x40xf32>
    %cst_37 = arith.constant dense<0.000000e+00> : vector<8x128xf32>
    %41 = tpu.matmul %40, %39, %cst_37 {dimension_numbers = #tpu.dot_dimension_numbers<[1], [0], [0], [1], [0, 0, 1, 1], [], []>} : vector<8x40xf32>, vector<40x128xf32>, vector<8x128xf32> -> vector<8x128xf32>
    %c0_38 = arith.constant 0 : index
    %c0_39 = arith.constant 0 : index
    %42 = vector.load %arg6[%c0_38, %c0_39] : memref<8x1xf32, #tpu.memory_space<vmem>>, vector<8x1xf32>
    %43 = vector.broadcast %42 : vector<8x1xf32> to vector<8x128xf32>
    %44 = arith.addf %41, %43 : vector<8x128xf32>
    %c0_40 = arith.constant 0 : index
    %c0_41 = arith.constant 0 : index
    %45 = vector.load %arg9[%c0_40, %c0_41] : memref<8x1xf32, #tpu.memory_space<vmem>>, vector<8x1xf32>
    %cst_42 = arith.constant 0.000000e+00 : f32
    %46 = vector.broadcast %cst_42 : f32 to vector<8x128xf32>
    %47 = arith.cmpf oge, %44, %46 : vector<8x128xf32>
    %48 = vector.broadcast %45 : vector<8x1xf32> to vector<8x128xf32>
    %49 = arith.mulf %48, %44 : vector<8x128xf32>
    %50 = arith.select %47, %44, %49 : vector<8x128xi1>, vector<8x128xf32>
    %c0_43 = arith.constant 0 : index
    %c0_44 = arith.constant 0 : index
    %51 = vector.load %arg12[%c0_43, %c0_44] : memref<8x1xf32, #tpu.memory_space<vmem>>, vector<8x1xf32>
    %c0_45 = arith.constant 0 : index
    %c0_46 = arith.constant 0 : index
    %c0_47 = arith.constant 0 : index
    %52 = vector.load %arg15[%c0_45, %c0_46, %c0_47] : memref<1x8x128xf32, #tpu.memory_space<vmem>>, vector<1x8x128xf32>
    %53 = vector.shape_cast %52 : vector<1x8x128xf32> to vector<8x128xf32>
    %54 = vector.broadcast %51 : vector<8x1xf32> to vector<8x128xf32>
    %55 = arith.mulf %54, %53 : vector<8x128xf32>
    %56 = arith.addf %50, %55 : vector<8x128xf32>
    %57 = tpu.iota {dimensions = array<i32: 1>} : vector<8x128xi32>
    %c40_i32 = arith.constant 40 : i32
    %58 = vector.broadcast %c40_i32 : i32 to vector<8x128xi32>
    %59 = arith.cmpi slt, %57, %58 : vector<8x128xi32>
    %cst_48 = arith.constant 0.000000e+00 : f32
    %60 = vector.broadcast %cst_48 : f32 to vector<8x128xf32>
    %61 = arith.select %59, %56, %60 : vector<8x128xi1>, vector<8x128xf32>
    %c0_49 = arith.constant 0 : index
    %c128_50 = arith.constant 128 : index
    %62 = vector.load %arg18[%c0_49, %c128_50] : memref<16x256xf32, #tpu.memory_space<vmem>>, vector<8x128xf32>
    tpu.vector_store %arg18[%c0_49, %c128_50], %61 {strides = array<i32>} : memref<16x256xf32, #tpu.memory_space<vmem>>, vector<8x128xf32>,
    %c0_51 = arith.constant 0 : index
    %c128_52 = arith.constant 128 : index
    %63 = vector.load %arg18[%c0_51, %c128_52] : memref<16x256xf32, #tpu.memory_space<vmem>>, vector<8x128xf32>
    %c0_53 = arith.constant 0 : index
    %c127 = arith.constant 127 : index
    %64 = vector.load %arg18[%c0_53, %c127] : memref<16x256xf32, #tpu.memory_space<vmem>>, vector<8x128xf32>
    %c0_54 = arith.constant 0 : index
    %c126_55 = arith.constant 126 : index
    %65 = vector.load %arg18[%c0_54, %c126_55] : memref<16x256xf32, #tpu.memory_space<vmem>>, vector<8x128xf32>
    %c0_56 = arith.constant 0 : index
    %c125 = arith.constant 125 : index
    %66 = vector.load %arg18[%c0_56, %c125] : memref<16x256xf32, #tpu.memory_space<vmem>>, vector<8x128xf32>
    %c0_57 = arith.constant 0 : index
    %c124_58 = arith.constant 124 : index
    %67 = vector.load %arg18[%c0_57, %c124_58] : memref<16x256xf32, #tpu.memory_space<vmem>>, vector<8x128xf32>
    %68 = tpu.concatenate %63, %64, %65, %66, %67 in 0 : vector<8x128xf32>, vector<8x128xf32>, vector<8x128xf32>, vector<8x128xf32>, vector<8x128xf32> -> vector<40x128xf32>
    %c0_59 = arith.constant 0 : index
    %c0_60 = arith.constant 0 : index
    %69 = vector.load %arg4[%c0_59, %c0_60] : memref<8x40xf32, #tpu.memory_space<vmem>>, vector<8x40xf32>
    %cst_61 = arith.constant dense<0.000000e+00> : vector<8x128xf32>
    %70 = tpu.matmul %69, %68, %cst_61 {dimension_numbers = #tpu.dot_dimension_numbers<[1], [0], [0], [1], [0, 0, 1, 1], [], []>} : vector<8x40xf32>, vector<40x128xf32>, vector<8x128xf32> -> vector<8x128xf32>
    %c0_62 = arith.constant 0 : index
    %c0_63 = arith.constant 0 : index
    %71 = vector.load %arg7[%c0_62, %c0_63] : memref<8x1xf32, #tpu.memory_space<vmem>>, vector<8x1xf32>
    %72 = vector.broadcast %71 : vector<8x1xf32> to vector<8x128xf32>
    %73 = arith.addf %70, %72 : vector<8x128xf32>
    %c0_64 = arith.constant 0 : index
    %c0_65 = arith.constant 0 : index
    %74 = vector.load %arg10[%c0_64, %c0_65] : memref<8x1xf32, #tpu.memory_space<vmem>>, vector<8x1xf32>
    %cst_66 = arith.constant 0.000000e+00 : f32
    %75 = vector.broadcast %cst_66 : f32 to vector<8x128xf32>
    %76 = arith.cmpf oge, %73, %75 : vector<8x128xf32>
    %77 = vector.broadcast %74 : vector<8x1xf32> to vector<8x128xf32>
    %78 = arith.mulf %77, %73 : vector<8x128xf32>
    %79 = arith.select %76, %73, %78 : vector<8x128xi1>, vector<8x128xf32>
    %c0_67 = arith.constant 0 : index
    %c0_68 = arith.constant 0 : index
    %80 = vector.load %arg13[%c0_67, %c0_68] : memref<8x1xf32, #tpu.memory_space<vmem>>, vector<8x1xf32>
    %c0_69 = arith.constant 0 : index
    %c0_70 = arith.constant 0 : index
    %c0_71 = arith.constant 0 : index
    %81 = vector.load %arg16[%c0_69, %c0_70, %c0_71] : memref<1x8x128xf32, #tpu.memory_space<vmem>>, vector<1x8x128xf32>
    %82 = vector.shape_cast %81 : vector<1x8x128xf32> to vector<8x128xf32>
    %83 = vector.broadcast %80 : vector<8x1xf32> to vector<8x128xf32>
    %84 = arith.mulf %83, %82 : vector<8x128xf32>
    %85 = arith.addf %79, %84 : vector<8x128xf32>
    %c0_72 = arith.constant 0 : index
    %c0_73 = arith.constant 0 : index
    %c0_74 = arith.constant 0 : index
    %86 = vector.load %arg17[%c0_72, %c0_73, %c0_74] : memref<1x8x128xf32, #tpu.memory_space<vmem>>, vector<1x8x128xf32>
    %87 = vector.shape_cast %86 : vector<1x8x128xf32> to vector<8x128xf32>
    %88 = vector.shape_cast %85 : vector<8x128xf32> to vector<1x8x128xf32>
    tpu.vector_store %arg17[%c0_72, %c0_73, %c0_74], %88 {strides = array<i32>} : memref<1x8x128xf32, #tpu.memory_space<vmem>>, vector<1x8x128xf32>,
    return
  }
  func.func @transform_0(%arg0: i32) -> (i32, i32, i32) {
    %c0_i32 = arith.constant 0 : i32
    %c0_i32_0 = arith.constant 0 : i32
    %c0_i32_1 = arith.constant 0 : i32
    return %arg0, %c0_i32, %c0_i32_0 : i32, i32, i32
  }
  func.func @transform_1(%arg0: i32) -> (i32, i32) {
    %c0_i32 = arith.constant 0 : i32
    %c0_i32_0 = arith.constant 0 : i32
    %c0_i32_1 = arith.constant 0 : i32
    return %c0_i32, %c0_i32_0 : i32, i32
  }
  func.func @transform_2(%arg0: i32) -> (i32, i32) {
    %c0_i32 = arith.constant 0 : i32
    %c0_i32_0 = arith.constant 0 : i32
    %c0_i32_1 = arith.constant 0 : i32
    return %c0_i32, %c0_i32_0 : i32, i32
  }
  func.func @transform_3(%arg0: i32) -> (i32, i32) {
    %c0_i32 = arith.constant 0 : i32
    %c0_i32_0 = arith.constant 0 : i32
    %c0_i32_1 = arith.constant 0 : i32
    return %c0_i32, %c0_i32_0 : i32, i32
  }
  func.func @transform_4(%arg0: i32) -> (i32, i32) {
    %c0_i32 = arith.constant 0 : i32
    %c0_i32_0 = arith.constant 0 : i32
    %c0_i32_1 = arith.constant 0 : i32
    return %c0_i32, %c0_i32_0 : i32, i32
  }
  func.func @transform_5(%arg0: i32) -> (i32, i32) {
    %c0_i32 = arith.constant 0 : i32
    %c0_i32_0 = arith.constant 0 : i32
    %c0_i32_1 = arith.constant 0 : i32
    return %c0_i32, %c0_i32_0 : i32, i32
  }
  func.func @transform_6(%arg0: i32) -> (i32, i32) {
    %c0_i32 = arith.constant 0 : i32
    %c0_i32_0 = arith.constant 0 : i32
    %c0_i32_1 = arith.constant 0 : i32
    return %c0_i32, %c0_i32_0 : i32, i32
  }
  func.func @transform_7(%arg0: i32) -> (i32, i32) {
    %c0_i32 = arith.constant 0 : i32
    %c0_i32_0 = arith.constant 0 : i32
    %c0_i32_1 = arith.constant 0 : i32
    return %c0_i32, %c0_i32_0 : i32, i32
  }
  func.func @transform_8(%arg0: i32) -> (i32, i32) {
    %c0_i32 = arith.constant 0 : i32
    %c0_i32_0 = arith.constant 0 : i32
    %c0_i32_1 = arith.constant 0 : i32
    return %c0_i32, %c0_i32_0 : i32, i32
  }
  func.func @transform_9(%arg0: i32) -> (i32, i32) {
    %c0_i32 = arith.constant 0 : i32
    %c0_i32_0 = arith.constant 0 : i32
    %c0_i32_1 = arith.constant 0 : i32
    return %c0_i32, %c0_i32_0 : i32, i32
  }
  func.func @transform_10(%arg0: i32) -> (i32, i32) {
    %c0_i32 = arith.constant 0 : i32
    %c0_i32_0 = arith.constant 0 : i32
    %c0_i32_1 = arith.constant 0 : i32
    return %c0_i32, %c0_i32_0 : i32, i32
  }
  func.func @transform_11(%arg0: i32) -> (i32, i32) {
    %c0_i32 = arith.constant 0 : i32
    %c0_i32_0 = arith.constant 0 : i32
    %c0_i32_1 = arith.constant 0 : i32
    return %c0_i32, %c0_i32_0 : i32, i32
  }
  func.func @transform_12(%arg0: i32) -> (i32, i32) {
    %c0_i32 = arith.constant 0 : i32
    %c0_i32_0 = arith.constant 0 : i32
    %c0_i32_1 = arith.constant 0 : i32
    return %c0_i32, %c0_i32_0 : i32, i32
  }
  func.func @transform_13(%arg0: i32) -> (i32, i32, i32) {
    %c0_i32 = arith.constant 0 : i32
    %c0_i32_0 = arith.constant 0 : i32
    %c0_i32_1 = arith.constant 0 : i32
    return %arg0, %c0_i32, %c0_i32_0 : i32, i32, i32
  }
  func.func @transform_14(%arg0: i32) -> (i32, i32, i32) {
    %c0_i32 = arith.constant 0 : i32
    %c0_i32_0 = arith.constant 0 : i32
    %c0_i32_1 = arith.constant 0 : i32
    return %arg0, %c0_i32, %c0_i32_0 : i32, i32, i32
  }
  func.func @transform_15(%arg0: i32) -> (i32, i32, i32) {
    %c0_i32 = arith.constant 0 : i32
    %c0_i32_0 = arith.constant 0 : i32
    %c0_i32_1 = arith.constant 0 : i32
    return %arg0, %c0_i32, %c0_i32_0 : i32, i32, i32
  }
  func.func @transform_16(%arg0: i32) -> (i32, i32, i32) {
    %c0_i32 = arith.constant 0 : i32
    %c0_i32_0 = arith.constant 0 : i32
    %c0_i32_1 = arith.constant 0 : i32
    return %arg0, %c0_i32, %c0_i32_0 : i32, i32, i32
  }
}

</mosaic_0001>

<bundles_post_ra>
// kernel: _lambda_.1
= control target key start
LH: loop header
LB: loop body
LE: loop exit
PB: predicated region body
PF: predicated region fallthrough
CT: control target
= control target key end

     0   :  { %s1412_s21 = smov 0   ;;  %s1543_s0 = inlined_call_operand.vmem [shape: f32[2,16,128], index: 0, kind: input, shape index: {}]   ;;  %s1544_s1 = inlined_call_operand.vmem [shape: f32[8,80], index: 1, kind: input, shape index: {}]   ;;  %s1545_s2 = inlined_call_operand.vmem [shape: f32[8,40], index: 2, kind: input, shape index: {}]   ;;  %s1546_s3 = inlined_call_operand.vmem [shape: f32[8,40], index: 3, kind: input, shape index: {}]   ;;  %s1547_s4 = inlined_call_operand.vmem [shape: f32[8,1], index: 4, kind: input, shape index: {}, may-alias: {4,6}]   ;;  %s1548_s5 = inlined_call_operand.vmem [shape: f32[8,1], index: 5, kind: input, shape index: {}]   ;;  %s1549_s6 = inlined_call_operand.vmem [shape: f32[8,1], index: 6, kind: input, shape index: {}, may-alias: {4,6}]   ;;  %s1550_s7 = inlined_call_operand.vmem [shape: f32[8,1], index: 7, kind: input, shape index: {}, may-alias: {7,8,9}]   ;;  %s1551_s8 = inlined_call_operand.vmem [shape: f32[8,1], index: 8, kind: input, shape index: {}, may-alias: {7,8,9}]   ;;  %s1552_s9 = inlined_call_operand.vmem [shape: f32[8,1], index: 9, kind: input, shape index: {}, may-alias: {7,8,9}]   ;;  %s1553_s10 = inlined_call_operand.vmem [shape: f32[8,1], index: 10, kind: input, shape index: {}, may-alias: {10,11,12}]   ;;  %s1554_s11 = inlined_call_operand.vmem [shape: f32[8,1], index: 11, kind: input, shape index: {}, may-alias: {10,11,12}]   ;;  %s1555_s12 = inlined_call_operand.vmem [shape: f32[8,1], index: 12, kind: input, shape index: {}, may-alias: {10,11,12}]   ;;  %s1556_s13 = inlined_call_operand.vmem [shape: f32[2,8,128], index: 13, kind: input, shape index: {}]   ;;  %s1557_s14 = inlined_call_operand.vmem [shape: f32[2,8,128], index: 14, kind: input, shape index: {}]   ;;  %s1558_s15 = inlined_call_operand.vmem [shape: f32[2,8,128], index: 15, kind: input, shape index: {}]   ;;  %s1559_s16 = inlined_call_operand.vmem [shape: f32[2,8,128], index: 16, kind: output, shape index: {}]  }
   0x1   :  { %1560 = sst [smem:[#allocation3_spill]] %s1543_s0 }
   0x2 LB: > { %s1093_s22 = sadd.s32 4294967295, %s1312_s21   ;;  %p1097_p0 = scmp.ge.s32.totalorder %s1312_s21, 1  ;;  %s1312_s21 = sphi %s1412_s21, %s26_s21  }
   0x3   : > { %p489_p1 = scmp.lt.s32.totalorder %s1312_s21, 3 }
   0x5   : > { %p490_p2 = pnand %p1097_p0, %p489_p1 }
   0x6   : > { %p550_p3 = scmp.lt.s32.totalorder (!%p490_p2), %s1093_s22, 1  ;;  %v1314_v0 = vmov (!%p490_p2), 0.0|0.0   ;;  %s1561_s26 = sld [smem:[#allocation3_spill]] (!%p490_p2)  ;;  %v1315_v3 = vmov (!%p490_p2), 0.0   ;;  %vm1319_vm0 = vmmov (!%p490_p2), 0   ;;  %v1321_v7 = vmov (!%p490_p2), 0  }
   0x7   : > { %493 = sbr.rel (%p490_p2) target bundleno = 1081 (0x439), region = 84  ;;  %1184 = vmatprep.subr.bf16.mxu0 (!%p490_p2), %v1314_v0  ;;  %1199 = vmatprep.subr.bf16.mxu1 (!%p490_p2), %v1314_v0  ;;  %s1316_s28 = smov (!%p490_p2), 8   ;;  %v720_v8 = vld [vmem:[%s1550_s7] sm:$0xff] (!%p490_p2)  ;;  %vm595_vm1 = vcmask (!%p490_p2), 31744   ;;  %vm608_vm2 = vcmask (!%p490_p2), 64512   ;;  %vm621_vm3 = vcmask (!%p490_p2), 97280   ;;  %v738_v49 = vlaneseq (!%p490_p2) }
   0x8   : > { %s1317_s29 = smov (!%p490_p2), 4   ;;  %s1318_s30 = smov (!%p490_p2), 12   ;;  %1155 = vmatprep.mubr.msk.f32.mxu0 (!%p490_p2), %vm1319_vm0, %v1315_v3  ;;  %1168 = vmatprep.mubr.msk.f32.mxu1 (!%p490_p2), %vm1319_vm0, %v1315_v3  ;;  %v640_v9 = vld [vmem:[%s1547_s4] sm:$0xff] (!%p490_p2)  ;;  %vm634_vm4 = vcmask (!%p490_p2), 130048   ;;  %vm646_vm5 = vcmask (!%p490_p2), 654336   ;;  %vm751_vm8 = vcmask (!%p490_p2), 15360  }
   0x9   : > { %s1320_s0 = smov (!%p490_p2), 16   ;;  %1275 = vset.pattern.permute.xlu1 (!%p490_p2), %v1321_v7  ;;  %1274 = vset.pattern.permute.xlu0 (!%p490_p2), %v1321_v7  ;;  %v729_v10 = vld [vmem:[%s1553_s10] sm:$0xff] (!%p490_p2)  ;;  %v1465_v56 = vand.u32 (!%p490_p2), 127, %v738_v49  ;;  %s1323_s18 = smov (!%p490_p2), 6   ;;  %vm1324_vm9 = vmmov (!%p490_p2), 1   ;;  %vm764_vm11 = vcmask (!%p490_p2), 48128  }
   0xa   : > { %v639_v47 = vld [vmem:[%s1544_s1] sm:$0xff] (!%p490_p2)  ;;  %vm780_vm12 = vcmask (!%p490_p2), 326656   ;;  %s1325_s19 = smov (!%p490_p2), 1   ;;  %s1326_s20 = smov (!%p490_p2), 3   ;;  %vm883_vm15 = vcmask (!%p490_p2), 7168  }
   0xb   : > { %vm740_vm7 = vcmp.lt.s32.totalorder (!%p490_p2), %v1465_v56, 32  ;;  %v774_v63 = vld [vmem:[%s1548_s5] sm:$0xff] (!%p490_p2)  ;;  %vm872_vm14 = vcmp.lt.s32.totalorder (!%p490_p2), %v1465_v56, 40 }
   0xc   : > { %vm1201_vm10 = vmpackc.low (!%p490_p2), %vm1324_vm9, %vm740_vm7 }
   0xe   : > { %s1563_s22 = smov (!%p550_p3, %s1093_s22), 1 }
   0xf   : > { %s1109_s23 = sshll.u32 %s1563_s22, 4 }
  0x10   : > { %s554_s27 = scalar_lea.vmem %s1561_s26, %s1109_s23 }
  0x11   : > { %v575_v1 = vld [vmem:[%s554_s27] sm:$0xff]  ;;  %v576_v2 = vld [vmem:[%s554_s27 + $0x8] sm:$0xff]  ;;  %s1459_s27 = sshll.u32 %s1563_s22, 3  ;;  %s1322_s22 = smov 2  }
  0x12   : > { %v1244_v4 = vpack.i.bf16 %v575_v1, %v1315_v3  ;;  %v1249_v5 = vpack.i.bf16 %v576_v2, %v1315_v3  ;;  %v1185_v6 = vpack.c.bf16 %v576_v2, %v575_v1  ;;  %s558_s17 = scalar_lea.vmem %s1556_s13, %s1459_s27  ;;  %v863_v1 = vld [vmem:[%s1554_s11] sm:$0xff]  ;;  %s570_s23 = scalar_lea.vmem %s1559_s16, %s1459_s27 }
  0x13   : > { %v730_v52 = vld [vmem:[%s558_s17] sm:$0xff] }
  0x14   : > { %1245 = vrot.lane.b32.xlu1 %v1244_v4, %s1316_s28  ;;  %1235 = vrot.lane.b32.xlu0 %v1244_v4, %s1317_s29  ;;  %v854_v2 = vld [vmem:[%s1551_s8] sm:$0xff] }
  0x15   : > { %1186 = vmatpush3.bf16.msra.mxu0 %v1185_v6 }
  0x16   : > { %1187 = vmatprep.subr.bf16.mxu0 %v1314_v0 }
  0x18   : > { %1250 = vrot.lane.b32.xlu1 %v1249_v5, %s1316_s28  ;;  %1240 = vrot.lane.b32.xlu0 %v1249_v5, %s1317_s29 }
  0x1c   : > { %1260 = vrot.lane.b32.xlu1 %v1249_v5, %s1318_s30  ;;  %1255 = vrot.lane.b32.xlu0 %v1244_v4, %s1318_s30 }
  0x20   : > { %1270 = vrot.lane.b32.xlu1 %v1249_v5, %s1320_s0  ;;  %1265 = vrot.lane.b32.xlu0 %v1244_v4, %s1320_s0 }
  0x24   : > { %724 = vperm.xlu1 %1275, %v720_v8   ;;  %643 = vperm.xlu0 %1274, %v640_v9  }
  0x28   : > { %733 = vperm.xlu1 %1275, %v729_v10  }
  0x86   : > { %v1246_v11 = vpop.permute.xlu1 %1245  ;;  %v1236_v12 = vpop.permute.xlu0 %1235 }
  0x87   : > { %v1238_v13 = vunpack.i.h.bf16 %v1236_v12  ;;  %v1237_v14 = vunpack.i.l.bf16 %v1236_v12  ;;  %v1248_v15 = vunpack.i.h.bf16 %v1246_v11  ;;  %v1247_v16 = vunpack.i.l.bf16 %v1246_v11 }
  0x89   : > { %v596_v23 = vsel %vm595_vm1, %v1237_v14, %v1238_v13  ;;  %v609_v28 = vsel %vm608_vm2, %v1247_v16, %v1248_v15 }
  0x8a   : > { %v1251_v17 = vpop.permute.xlu1 %1250  ;;  %v1241_v18 = vpop.permute.xlu0 %1240 }
  0x8b   : > { %v1253_v19 = vunpack.i.h.bf16 %v1251_v17  ;;  %v1252_v20 = vunpack.i.l.bf16 %v1251_v17  ;;  %v1243_v21 = vunpack.i.h.bf16 %v1241_v18  ;;  %v1242_v22 = vunpack.i.l.bf16 %v1241_v18 }
  0x8d   : > { %v597_v24 = vsel %vm595_vm1, %v1242_v22, %v1243_v21  ;;  %v610_v29 = vsel %vm608_vm2, %v1252_v20, %v1253_v19  ;;  %v773_v20 = vld [vmem:[%s1545_s2] sm:$0xff] }
  0x8e   : > { %v1188_v25 = vpack.c.bf16 %v597_v24, %v596_v23  ;;  %v1261_v26 = vpop.permute.xlu1 %1260  ;;  %v1256_v27 = vpop.permute.xlu0 %1255  ;;  %v1191_v36 = vpack.c.bf16 %v610_v29, %v609_v28 }
  0x8f   : > { %v1263_v30 = vunpack.i.h.bf16 %v1261_v26  ;;  %v1262_v31 = vunpack.i.l.bf16 %v1261_v26  ;;  %v1258_v32 = vunpack.i.h.bf16 %v1256_v27  ;;  %v1257_v33 = vunpack.i.l.bf16 %v1256_v27 }
  0x90   : > { %1189 = vmatpush3.bf16.msra.mxu0 %v1188_v25 }
  0x91   : > { %1190 = vmatprep.subr.bf16.mxu0 %v1314_v0  ;;  %v622_v34 = vsel %vm621_vm3, %v1257_v33, %v1258_v32  ;;  %v623_v35 = vsel %vm621_vm3, %v1262_v31, %v1263_v30 }
  0x92   : > { %v1271_v37 = vpop.permute.xlu1 %1270  ;;  %v1266_v38 = vpop.permute.xlu0 %1265  ;;  %v1194_v43 = vpack.c.bf16 %v623_v35, %v622_v34  ;;  %v906_v35 = vld [vmem:[%s1549_s6] sm:$0xff] }
  0x93   : > { %v1273_v39 = vunpack.i.h.bf16 %v1271_v37  ;;  %v1272_v40 = vunpack.i.l.bf16 %v1271_v37  ;;  %v1268_v41 = vunpack.i.h.bf16 %v1266_v38  ;;  %v1267_v42 = vunpack.i.l.bf16 %v1266_v38  ;;  %v985_v37 = vld [vmem:[%s1552_s9] sm:$0xff] }
  0x94   : > { %1192 = vmatpush3.bf16.msra.mxu0 %v1191_v36  ;;  %v994_v36 = vld [vmem:[%s1555_s12] sm:$0xff] }
  0x95   : > { %1193 = vmatprep.subr.bf16.mxu0 %v1314_v0  ;;  %v635_v44 = vsel %vm634_vm4, %v1267_v42, %v1268_v41  ;;  %v636_v45 = vsel %vm634_vm4, %v1272_v40, %v1273_v39 }
  0x96   : > { %v1197_v46 = vpack.c.bf16 %v636_v45, %v635_v44 }
  0x98   : > { %1195 = vmatpush3.bf16.msra.mxu0 %v1194_v43 }
  0x99   : > { %1196 = vmatprep.subr.bf16.mxu0 %v1314_v0 }
  0x9c   : > { %1198 = vmatpush3.bf16.msra.mxu0 %v1197_v46 }
  0x9f   : > { %1156 = vmatmul.mubr.msk.f32.vlgmr.msra.gmra.mrb[0].mxu0 %vm646_vm5, %v639_v47 }
  0xa3   : > { %v725_v48 = vpop.permute.xlu1 %724  ;;  %v644_v50 = vpop.permute.xlu0 %643 }
  0xa7   : > { %v734_v53 = vpop.permute.xlu1 %733 }
  0xa8   : > { %v736_v58 = vmul.f32 %v734_v53, %v730_v52 }
 0x172   : > { %v716_v51 = vpop.f32.mrb[0].mxu0 }
 0x173   : > { %v717_v54 = vadd.f32 %v716_v51, %v644_v50  ;;  %v1157_v55 = vpop.f32.mrb[1].mxu0 }
 0x175   : > { %vm721_vm6 = vcmp.ge.f32.partialorder %v717_v54, 0.0  ;;  %v727_v57 = vmul.f32 %v725_v48, %v717_v54 }
 0x177   : > { %v728_v59 = vsel %vm721_vm6, %v717_v54, %v727_v57  ;;  %v905_v54 = vld [vmem:[%s1546_s3] sm:$0xff] }
 0x178   : > { %v737_v60 = vadd.f32 %v736_v58, %v728_v59 }
 0x17a   : > { %v741_v61 = vsel %vm740_vm7, %v737_v60, 0.0 }
 0x17b   : > { %v1281_v62 = vpack.i.bf16 %v741_v61, %v1315_v3 }
 0x17d   : > { %1282 = vrot.lane.b32.xlu1 %v1281_v62, %s1317_s29  ;;  %1277 = vrot.lane.b32.xlu0 %v1281_v62, %s1322_s22 }
 0x181   : > { %767 = vrot.lane.b32.xlu1 %v1315_v3, %s1316_s28  ;;  %1287 = vrot.lane.b32.xlu0 %v1281_v62, %s1323_s18  ;;  %s562_s18 = scalar_lea.vmem %s1557_s14, %s1459_s27 }
 0x182   : > { %v864_v24 = vld [vmem:[%s562_s18] sm:$0xff]  ;;  %s566_s18 = scalar_lea.vmem %s1558_s15, %s1459_s27 }
 0x183   : > { %v995_v57 = vld [vmem:[%s566_s18] sm:$0xff] }
 0x185   : > { %777 = vperm.xlu1 %1275, %v774_v63   ;;  %769 = vrot.lane.b32.xlu0 %v741_v61, %s1316_s28 }
 0x189   : > { %867 = vperm.xlu1 %1275, %v863_v1   ;;  %858 = vperm.xlu0 %1274, %v854_v2  }
 0x1ef   : > { %v1283_v4 = vpop.permute.xlu1 %1282  ;;  %v1278_v5 = vpop.permute.xlu0 %1277 }
 0x1f0   : > { %v1280_v6 = vunpack.i.h.bf16 %v1278_v5  ;;  %v1279_v7 = vunpack.i.l.bf16 %v1278_v5  ;;  %v1285_v8 = vunpack.i.h.bf16 %v1283_v4  ;;  %v1284_v9 = vunpack.i.l.bf16 %v1283_v4 }
 0x1f2   : > { %v752_v10 = vsel %vm751_vm8, %v1279_v7, %v1280_v6  ;;  %v758_v15 = vsel %vm595_vm1, %v1284_v9, %v1285_v8 }
 0x1f3   : > { %v1288_v11 = vpop.permute.xlu0 %1287  ;;  %v1200_v12 = vpack.c.bf16 %v752_v10, %v737_v60  ;;  %v768_v18 = vpop.permute.xlu1 %767 }
 0x1f4   : > { %v1290_v13 = vunpack.i.h.bf16 %v1288_v11  ;;  %v1289_v14 = vunpack.i.l.bf16 %v1288_v11 }
 0x1f5   : > { %1202 = vmatpush3.bf16.msk.msra.mxu1 %vm1201_vm10, %v1200_v12 }
 0x1f6   : > { %1203 = vmatprep.subr.bf16.mxu1 %v1314_v0  ;;  %v765_v16 = vsel %vm764_vm11, %v1289_v14, %v1290_v13 }
 0x1f7   : > { %v1204_v17 = vpack.c.bf16 %v765_v16, %v758_v15  ;;  %v770_v19 = vpop.permute.xlu0 %769 }
 0x1f8   : > { %v771_v21 = vsel %vm608_vm2, %v768_v18, %v770_v19  ;;  %vm896_vm2 = vcmask 23552  }
 0x1f9   : > { %1205 = vmatpush3.bf16.msra.mxu1 %v1204_v17 }
 0x1fa   : > { %1166 = vmatprep.subr.mxu1 %v1315_v3 }
 0x1fd   : > { %1167 = vmatpush3.msra.mxu1 %v771_v21 }
 0x1fe   : > { %1169 = vmatmul.mubr.msk.f32.vlgmr.msra.gmra.mrb[0].mxu1 %vm780_vm12, %v773_v20  ;;  %1206 = vmatprep.subr.bf16.mxu1 %v1314_v0 }
 0x1ff   : > { %1181 = vmatprep.mubr.msk.f32.mxu1 %vm1319_vm0, %v1315_v3  ;;  %vm1208_vm0 = vmpackc.low %vm1324_vm9, %vm872_vm14 }
 0x204   : > { %v778_v22 = vpop.permute.xlu1 %777 }
 0x208   : > { %v868_v25 = vpop.permute.xlu1 %867  ;;  %v859_v28 = vpop.permute.xlu0 %858 }
 0x209   : > { %v870_v30 = vmul.f32 %v868_v25, %v864_v24 }
 0x2d1   : > { %v850_v23 = vpop.f32.mrb[0].mxu1 }
 0x2d2   : > { %v851_v26 = vadd.f32 %v850_v23, %v778_v22  ;;  %v1170_v27 = vpop.f32.mrb[1].mxu1 }
 0x2d4   : > { %vm855_vm13 = vcmp.ge.f32.partialorder %v851_v26, 0.0  ;;  %v861_v29 = vmul.f32 %v859_v28, %v851_v26 }
 0x2d6   : > { %v862_v31 = vsel %vm855_vm13, %v851_v26, %v861_v29 }
 0x2d7   : > { %v871_v32 = vadd.f32 %v870_v30, %v862_v31 }
 0x2d9   : > { %v873_v33 = vsel %vm872_vm14, %v871_v32, 0.0 }
 0x2da   : > { %v1296_v34 = vpack.i.bf16 %v873_v33, %v1315_v3 }
 0x2dc   : > { %1297 = vrot.lane.b32.xlu1 %v1296_v34, %s1322_s22  ;;  %1292 = vrot.lane.b32.xlu0 %v1296_v34, %s1325_s19 }
 0x2e0   : > { %899 = vrot.lane.b32.xlu1 %v1315_v3, %s1317_s29  ;;  %1302 = vrot.lane.b32.xlu0 %v1296_v34, %s1326_s20 }
 0x2e4   : > { %909 = vperm.xlu1 %1275, %v906_v35   ;;  %901 = vrot.lane.b32.xlu0 %v873_v33, %s1317_s29 }
 0x2e8   : > { %998 = vperm.xlu1 %1275, %v994_v36   ;;  %989 = vperm.xlu0 %1274, %v985_v37  }
 0x34e   : > { %v1298_v38 = vpop.permute.xlu1 %1297  ;;  %v1293_v39 = vpop.permute.xlu0 %1292 }
 0x34f   : > { %v1295_v40 = vunpack.i.h.bf16 %v1293_v39  ;;  %v1294_v41 = vunpack.i.l.bf16 %v1293_v39  ;;  %v1300_v42 = vunpack.i.h.bf16 %v1298_v38  ;;  %v1299_v43 = vunpack.i.l.bf16 %v1298_v38 }
 0x351   : > { %v884_v44 = vsel %vm883_vm15, %v1294_v41, %v1295_v40  ;;  %v890_v49 = vsel %vm751_vm8, %v1299_v43, %v1300_v42 }
 0x352   : > { %v1207_v45 = vpack.c.bf16 %v884_v44, %v871_v32  ;;  %v1303_v46 = vpop.permute.xlu0 %1302  ;;  %v900_v52 = vpop.permute.xlu1 %899 }
 0x353   : > { %v1305_v47 = vunpack.i.h.bf16 %v1303_v46  ;;  %v1304_v48 = vunpack.i.l.bf16 %v1303_v46 }
 0x354   : > { %1209 = vmatpush3.bf16.msk.msra.mxu1 %vm1208_vm0, %v1207_v45 }
 0x355   : > { %v897_v50 = vsel %vm896_vm2, %v1304_v48, %v1305_v47  ;;  %1210 = vmatprep.subr.bf16.mxu1 %v1314_v0 }
 0x356   : > { %v1211_v51 = vpack.c.bf16 %v897_v50, %v890_v49  ;;  %v902_v53 = vpop.permute.xlu0 %901 }
 0x357   : > { %v903_v55 = vsel %vm595_vm1, %v900_v52, %v902_v53 }
 0x358   : > { %1212 = vmatpush3.bf16.msra.mxu1 %v1211_v51 }
 0x359   : > { %1179 = vmatprep.subr.mxu1 %v1315_v3 }
 0x35c   : > { %1180 = vmatpush3.msra.mxu1 %v903_v55 }
 0x35d   : > { %1182 = vmatmul.mubr.msk.f32.vlgmr.msra.gmra.mrb[2].mxu1 %vm780_vm12, %v905_v54 }
 0x363   : > { %v910_v56 = vpop.permute.xlu1 %909 }
 0x367   : > { %v999_v58 = vpop.permute.xlu1 %998  ;;  %v990_v60 = vpop.permute.xlu0 %989 }
 0x368   : > { %v1001_v62 = vmul.f32 %v999_v58, %v995_v57 }
 0x430   : > { %v981_v0 = vpop.f32.mrb[2].mxu1 }
 0x431   : > { %v982_v59 = vadd.f32 %v981_v0, %v910_v56  ;;  %v1183_v3 = vpop.f32.mrb[3].mxu1 }
 0x433   : > { %vm986_vm3 = vcmp.ge.f32.partialorder %v982_v59, 0.0  ;;  %v992_v61 = vmul.f32 %v990_v60, %v982_v59 }
 0x435   : > { %v993_v63 = vsel %vm986_vm3, %v982_v59, %v992_v61 }
 0x436   : > { %v1002_v1 = vadd.f32 %v1001_v62, %v993_v63 }
 0x438   : > { %1003 = vst [vmem:[%s570_s23] sm:$0xff] %v1002_v1 }
 0x439 PF: > { %s26_s21 = sadd.s32 1, %s1312_s21  }
 0x43a   : > { %p23_p4 = scmp.ge.s32.totalorder %s26_s21, 4  }
 0x43c   :  { %25 = sbr.rel (!%p23_p4) target bundleno = 2 (0x2), region = 123 }

</bundles_post_ra>
